<compile_context>
chip_gen: v7x
topology: tpu7x:2x2x1
jax: 0.10.0
libtpu: 0.0.40
codegen_flags: <defaults>
</compile_context>

<pallas_src>
import functools

import jax
import jax.numpy as jnp
from jax import lax
from jax.experimental import pallas as pl
from jax.experimental.pallas import tpu as pltpu

SIGMA = 1.0
W_LEAK = 0.2
EPS = 1e-9

_LANE = 128
_SUBLANE = 8
_TARGET_TILE_BYTES = 2 * 1024 * 1024   # ~2 MiB of distances per grid step
_ROW_TILE_CAP = 1024                   # use full R below this, else tile rows
_ROW_TILE = 512                        # row tile (multiple of 8) for large R


def _vmem_capacity_bytes():
    """Trace-time query of per-core VMEM; falls back to 128 MiB."""
    try:
        info = pltpu.get_tpu_info()
        cap = int(getattr(info, "vmem_capacity_bytes", 0) or 0)
        if cap > 0:
            return cap
    except Exception:
        pass
    return 128 * 1024 * 1024


def _round_down_lane(x):
    return max(_LANE, (x // _LANE) * _LANE)


def _pick_c_tile(C, cand):
    """Pick a lane tile <= cand; prefer a 128-multiple divisor of C (no masking)."""
    cand = _round_down_lane(int(cand))
    if C <= cand:
        return C                        # one full-width tile, never masked
    t = cand
    while t >= _LANE:                   # largest 128-multiple divisor of C <= cand
        if C % t == 0:
            if 2 * t >= cand:           # accept only if it doesn't shrink tiles much
                return t
            break
        t -= _LANE
    return cand                         # masked ragged tail


def _reg_metric_partial_kernel(w_ref, ld_ref, d_ref, out_ref, *,
                               r_total, c_total, r_tile, c_tile,
                               mask_rows, mask_cols):
    # w_ref, ld_ref : (r_tile, 1) f32   -- lane-broadcast inside the kernel
    # d_ref         : (r_tile, c_tile) input dtype (f32 or bf16)
    # out_ref       : (8, 128) f32      -- this grid step's partial sum
    d = d_ref[...].astype(jnp.float32)                  # bf16 -> f32 per tile
    wdiff = w_ref[...] * jnp.abs(d - ld_ref[...])       # 3 VALU ops / element

    if mask_cols:
        # fold k*c_tile onto the scalar side: lane < C_total - k*c_tile
        c_left = c_total - pl.program_id(1) * c_tile
        lane = lax.broadcasted_iota(jnp.int32, (r_tile, c_tile), 1)
        wdiff = jnp.where(lane < c_left, wdiff, 0.0)
    if mask_rows:
        r_left = r_total - pl.program_id(0) * r_tile
        sub = lax.broadcasted_iota(jnp.int32, (r_tile, c_tile), 0)
        wdiff = jnp.where(sub < r_left, wdiff, 0.0)

    # Single unmasked lane-dense store; wrapper reads one element per block.
    out_ref[...] = jnp.full(out_ref.shape, jnp.sum(wdiff), out_ref.dtype)


def reg_metric_loss_protos(distances, label, proto_classes, *,
                           sigma=SIGMA, w_leak=W_LEAK, eps=EPS):
    """Pallas implementation of RegMetricLoss_Protos.forward.

    distances:     [B, P] or [B, P, H, W] (f32 or bf16)
    label:         [B]
    proto_classes: [P]   (stands in for model.proto_classes)
    """
    label = label.astype(jnp.float32)
    proto = proto_classes.astype(jnp.float32)

    if distances.ndim == 2:
        # Tiny [B, P] reduction: pallas_call dispatch + pipeline prologue would
        # dominate a few-KB reduction -> compute directly in XLA.
        l_dist = jnp.abs(label[:, None] - proto[None, :])
        w = jnp.exp(-jnp.square(l_dist / sigma) / 2.0) + w_leak
        diff = jnp.abs(distances.astype(jnp.float32) - l_dist)
        return jnp.sum(w * diff) / (jnp.sum(w) + eps)

    if distances.ndim != 4:
        raise ValueError("distances must be 2D [B,P] or 4D [B,P,H,W]")

    B, P, H, Wd = distances.shape
    R, C = B * P, H * Wd
    ld = jnp.abs(label[:, None] - proto[None, :]).reshape(R, 1)   # (R, 1) f32
    w = jnp.exp(-jnp.square(ld / sigma) / 2.0) + w_leak           # (R, 1) f32
    den = jnp.sum(w) + eps                                        # over B,P only
    d2 = distances.reshape(R, C)                                  # lane-dense slab
    itemsize = jnp.dtype(d2.dtype).itemsize

    # --- generation-aware VMEM budgets ---------------------------------------
    vmem_cap = _vmem_capacity_bytes()
    is_two_core = vmem_cap <= 96 * 1024 * 1024    # v7x proxy: 64 MiB VMEM, 2 TCs
    if is_two_core:
        budget = 20 * 1024 * 1024                 # double-buffered input footprint
        vmem_limit = min(48 * 1024 * 1024, vmem_cap)
    else:
        budget = 28 * 1024 * 1024
        vmem_limit = 64 * 1024 * 1024

    # --- row (sublane) tile ---------------------------------------------------
    r_tile = R if R <= _ROW_TILE_CAP else _ROW_TILE
    nr = (R + r_tile - 1) // r_tile
    mask_rows = (R % r_tile) != 0

    # --- lane tile: per-step byte target, clamped by the VMEM budget ----------
    wld_bytes = 4 * r_tile * _LANE * 4            # w + ld, lane-padded, 2 buffers
    avail = max(budget - wld_bytes, 2 * r_tile * _LANE * itemsize)
    by_vmem = avail // (2 * r_tile * itemsize)
    by_target = max(1, _TARGET_TILE_BYTES // (r_tile * itemsize))
    c_tile = _pick_c_tile(C, min(by_vmem, by_target))
    nc = (C + c_tile - 1) // c_tile
    mask_cols = (C % c_tile) != 0

    # v7x: keep >= 2 grid steps so the parallel grid shards across both cores.
    if is_two_core and nr * nc == 1 and C >= 2 * _LANE:
        half = (C + 1) // 2
        c_tile = ((half + _LANE - 1) // _LANE) * _LANE
        nc = (C + c_tile - 1) // c_tile
        mask_cols = (C % c_tile) != 0

    kernel = functools.partial(
        _reg_metric_partial_kernel,
        r_total=R, c_total=C, r_tile=r_tile, c_tile=c_tile,
        mask_rows=mask_rows, mask_cols=mask_cols)

    cost = pl.CostEstimate(
        flops=3 * R * C,
        transcendentals=0,
        bytes_accessed=R * C * itemsize + 2 * R * 4 + nr * nc * _SUBLANE * _LANE * 4,
    )

    partials = pl.pallas_call(
        kernel,
        out_shape=jax.ShapeDtypeStruct((nr * _SUBLANE, nc * _LANE), jnp.float32),
        grid=(nr, nc),
        in_specs=[
            pl.BlockSpec((r_tile, 1), lambda r, c: (r, 0)),        # w
            pl.BlockSpec((r_tile, 1), lambda r, c: (r, 0)),        # l_dist
            pl.BlockSpec((r_tile, c_tile), lambda r, c: (r, c)),   # distances
        ],
        out_specs=pl.BlockSpec((_SUBLANE, _LANE), lambda r, c: (r, c)),
        compiler_params=pltpu.CompilerParams(
            dimension_semantics=("parallel", "parallel"),
            vmem_limit_bytes=vmem_limit,
        ),
        cost_estimate=cost,
    )(w, ld, d2)

    # One partial per grid step lives (replicated) in its own (8,128) block:
    # take one element per block, sum, and normalize in the wrapper.
    return jnp.sum(partials[0::_SUBLANE, 0::_LANE]) / den


def _reference(distances, label, proto_classes):
    if distances.ndim == 4:
        ls = label.reshape(-1, 1, 1, 1)
        lp = proto_classes.reshape(1, -1, 1, 1)
    else:
        ls = label[:, None]
        lp = proto_classes[None, :]
    l_dist = jnp.abs(ls - lp)
    w = jnp.exp(-jnp.square(l_dist / SIGMA) / 2.0) + W_LEAK
    diff = jnp.abs(distances.astype(jnp.float32) - l_dist)
    return jnp.sum(w * diff) / (jnp.sum(w) + EPS)


if __name__ == "__main__":
    key = jax.random.PRNGKey(0)
    B, P, H, W = 2, 4, 16, 16

    k1, k2, k3 = jax.random.split(key, 3)
    distances4 = jnp.abs(jax.random.normal(k1, (B, P, H, W), dtype=jnp.float32))
    label = jax.random.randint(k2, (B,), 0, P).astype(jnp.float32)
    proto_classes = jnp.arange(P, dtype=jnp.float32)

    # 4D branch (Pallas kernel)
    loss4 = jax.block_until_ready(reg_metric_loss_protos(distances4, label, proto_classes))
    ref4 = _reference(distances4, label, proto_classes)
    assert jnp.allclose(loss4, ref4, rtol=1e-5, atol=1e-6), (loss4, ref4)

    # 2D branch (tiny reduction -> pure XLA per perf review)
    distances2 = jnp.abs(jax.random.normal(k3, (B, P), dtype=jnp.float32))
    loss2 = jax.block_until_ready(reg_metric_loss_protos(distances2, label, proto_classes))
    ref2 = _reference(distances2, label, proto_classes)
    assert jnp.allclose(loss2, ref2, rtol=1e-5, atol=1e-6), (loss2, ref2)

    print("KERNEL_OK")
</pallas_src>

<mosaic_0001>
module attributes {stable_mosaic.version = 11 : i64} {
  func.func @_reg_metric_partial_kernel(%arg0: i32, %arg1: i32, %arg2: memref<8x1xf32, #tpu.memory_space<vmem>>, %arg3: memref<8x1xf32, #tpu.memory_space<vmem>>, %arg4: memref<8x256xf32, #tpu.memory_space<vmem>>, %arg5: memref<8x128xf32, #tpu.memory_space<vmem>>) attributes {dimension_semantics = [#tpu.dimension_semantics<parallel>, #tpu.dimension_semantics<parallel>], iteration_bounds = array<i64: 1, 1>, scalar_prefetch = 0 : i64, scratch_operands = 0 : i64, tpu.core_type = #tpu.core_type<tc>, window_params = [{transform_indices = @transform_0, window_bounds = array<i64: 8, 1>}, {transform_indices = @transform_1, window_bounds = array<i64: 8, 1>}, {transform_indices = @transform_2, window_bounds = array<i64: 8, 256>}, {transform_indices = @transform_3, window_bounds = array<i64: 8, 128>}]} {
    %c0 = arith.constant 0 : index
    %c0_0 = arith.constant 0 : index
    %0 = vector.load %arg4[%c0, %c0_0] : memref<8x256xf32, #tpu.memory_space<vmem>>, vector<8x256xf32>
    %c0_1 = arith.constant 0 : index
    %c0_2 = arith.constant 0 : index
    %1 = vector.load %arg2[%c0_1, %c0_2] : memref<8x1xf32, #tpu.memory_space<vmem>>, vector<8x1xf32>
    %c0_3 = arith.constant 0 : index
    %c0_4 = arith.constant 0 : index
    %2 = vector.load %arg3[%c0_3, %c0_4] : memref<8x1xf32, #tpu.memory_space<vmem>>, vector<8x1xf32>
    %3 = vector.broadcast %2 : vector<8x1xf32> to vector<8x256xf32>
    %4 = arith.subf %0, %3 : vector<8x256xf32>
    %5 = math.absf %4 : vector<8x256xf32>
    %6 = vector.broadcast %1 : vector<8x1xf32> to vector<8x256xf32>
    %7 = arith.mulf %6, %5 : vector<8x256xf32>
    %8 = vector.shape_cast %7 : vector<8x256xf32> to vector<1x8x256xf32>
    %cst = arith.constant dense<0.000000e+00> : vector<1xf32>
    %9 = vector.multi_reduction <add>, %8, %cst [1, 2] : vector<1x8x256xf32> to vector<1xf32>
    %10 = vector.shape_cast %9 : vector<1xf32> to vector<1x1x1xf32>
    %11 = vector.extract %10[0, 0, 0] : f32 from vector<1x1x1xf32>
    %12 = vector.broadcast %11 : f32 to vector<8x128xf32>
    %c0_5 = arith.constant 0 : index
    %c0_6 = arith.constant 0 : index
    %13 = vector.load %arg5[%c0_5, %c0_6] : memref<8x128xf32, #tpu.memory_space<vmem>>, vector<8x128xf32>
    tpu.vector_store %arg5[%c0_5, %c0_6], %12 {strides = array<i32>} : memref<8x128xf32, #tpu.memory_space<vmem>>, vector<8x128xf32>,
    return
  }
  func.func @transform_0(%arg0: i32, %arg1: i32) -> (i32, i32) {
    %c0_i32 = arith.constant 0 : i32
    %c0_i32_0 = arith.constant 0 : i32
    return %arg0, %c0_i32 : i32, i32
  }
  func.func @transform_1(%arg0: i32, %arg1: i32) -> (i32, i32) {
    %c0_i32 = arith.constant 0 : i32
    %c0_i32_0 = arith.constant 0 : i32
    return %arg0, %c0_i32 : i32, i32
  }
  func.func @transform_2(%arg0: i32, %arg1: i32) -> (i32, i32) {
    %c0_i32 = arith.constant 0 : i32
    return %arg0, %arg1 : i32, i32
  }
  func.func @transform_3(%arg0: i32, %arg1: i32) -> (i32, i32) {
    %c0_i32 = arith.constant 0 : i32
    return %arg0, %arg1 : i32, i32
  }
}

</mosaic_0001>

<bundles_post_ra>
// kernel: tpu_custom_call.1
= control target key start
LH: loop header
LB: loop body
LE: loop exit
PB: predicated region body
PF: predicated region fallthrough
CT: control target
= control target key end

     0   :  { %8 = vsyncpa [#allocation3], 0  ;;  %s273_s0 = inlined_call_operand.hbm [shape: f32[8,1], index: 0, kind: input, shape index: {}]   ;;  %s274_s1 = inlined_call_operand.hbm [shape: f32[8,1], index: 1, kind: input, shape index: {}]   ;;  %s275_s2 = inlined_call_operand.hbm [shape: f32[8,256], index: 2, kind: input, shape index: {}]   ;;  %s276_s3 = inlined_call_operand.hbm [shape: f32[8,128], index: 3, kind: output, shape index: {}]  }
   0x1   :  { %9 = vsyncpa [#allocation6], 0 }
   0x2   :  { %10 = vsyncpa [#allocation4], 0  ;;  %s200_s12 = smov [#allocation5]   ;;  %s201_s14 = smov [#allocation2]  }
   0x3   :  { %s27_s13 = sshll.u32 %s200_s12, 4  ;;  %s17_s15 = sshll.u32 %s201_s14, 4  ;;  %s28_s13 = int_to_ptr.vmem [resolvable:$true] %s27_s13  ;;  %s18_s15 = int_to_ptr.vmem [resolvable:$true] %s17_s15 }
   0x4   :  { %s106_s18 = scalar_lea.hbm %s274_s1, 128 }
   0x5   :  { %p107_p0 = scmp.ne.s32.totalorder %s274_s1, %s106_s18  ;;  %p110_p1 = scmp.lt.u32.totalorder %s106_s18, %s274_s1 }
   0x7   :  { %p112_p2 = pnand %p110_p1, %p107_p0 }
   0x9   :  { %115 = shalt.err (!%p112_p2)
}
   0xa   :  { %s116_s23 = scalar_lea.vmem %s28_s13, 128  ;;  %p121_p4 = scmp.lt.s32.totalorder %s28_s13, %s28_s13 }
   0xb   :  { %p117_p3 = scmp.ne.s32.totalorder %s28_s13, %s116_s23  ;;  %p122_p5 = scmp.lt.s32.totalorder %s116_s23, %s116_s23 }
   0xd   :  { %p123_p6 = por %p122_p5, %p121_p4 }
   0xf   :  { %p124_p7 = pnand %p123_p6, %p117_p3 }
  0x11   :  { %127 = shalt.err (!%p124_p7)
}
  0x12   :  { %30 = dma.hbm_to_vmem [thread:$0]  %s274_s1, 128, %s28_s13, [#allocation6]  }
  0x13   :  { %s128_s28 = scalar_lea.hbm %s273_s0, 128 }
  0x14   :  { %p129_p8 = scmp.ne.s32.totalorder %s273_s0, %s128_s28  ;;  %p132_p9 = scmp.lt.u32.totalorder %s128_s28, %s273_s0 }
  0x16   :  { %p134_p10 = pnand %p132_p9, %p129_p8 }
  0x18   :  { %137 = shalt.err (!%p134_p10)
}
  0x19   :  { %s138_s6 = scalar_lea.vmem %s18_s15, 128  ;;  %p143_p12 = scmp.lt.s32.totalorder %s18_s15, %s18_s15 }
  0x1a   :  { %p139_p11 = scmp.ne.s32.totalorder %s18_s15, %s138_s6  ;;  %p144_p13 = scmp.lt.s32.totalorder %s138_s6, %s138_s6 }
  0x1c   :  { %p145_p0 = por %p144_p13, %p143_p12 }
  0x1e   :  { %p146_p1 = pnand %p145_p0, %p139_p11 }
  0x20   :  { %149 = shalt.err (!%p146_p1)
}
  0x21   :  { %20 = dma.hbm_to_vmem [thread:$0]  %s273_s0, 128, %s18_s15, [#allocation3]  }
  0x22   :  { %s202_s8 = smov [#allocation7]   ;;  %s150_s12 = scalar_lea.hbm %s275_s2, 256 }
  0x23   :  { %s37_s9 = sshll.u32 %s202_s8, 4  ;;  %p151_p2 = scmp.ne.s32.totalorder %s275_s2, %s150_s12  ;;  %s38_s9 = int_to_ptr.vmem [resolvable:$true] %s37_s9 }
  0x24   :  { %p154_p3 = scmp.lt.u32.totalorder %s150_s12, %s275_s2 }
  0x26   :  { %p156_p4 = pnand %p154_p3, %p151_p2 }
  0x28   :  { %159 = shalt.err (!%p156_p4)
}
  0x29   :  { %s160_s18 = scalar_lea.vmem %s38_s9, 256  ;;  %p165_p6 = scmp.lt.s32.totalorder %s38_s9, %s38_s9 }
  0x2a   :  { %p161_p5 = scmp.ne.s32.totalorder %s38_s9, %s160_s18  ;;  %p166_p7 = scmp.lt.s32.totalorder %s160_s18, %s160_s18 }
  0x2c   :  { %p167_p8 = por %p166_p7, %p165_p6 }
  0x2e   :  { %p168_p9 = pnand %p167_p8, %p161_p5 }
  0x30   :  { %171 = shalt.err (!%p168_p9)
}
  0x31   :  { %40 = dma.hbm_to_vmem [thread:$0]  %s275_s2, 256, %s38_s9, [#allocation6]  }
  0x32   :  { %194 = dma.done.wait [#allocation3], 128  }
  0x33   :  { %195 = vsyncadd [#allocation3], 4294967168 }
  0x34   :  { %196 = dma.done.wait [#allocation6], 384  }
  0x35   :  { %197 = vsyncadd [#allocation6], 4294966912  ;;  %v203_v0 = vmov 0   ;;  %v53_v1 = vld [vmem:[#allocation5] sm:$0xff]  ;;  %v52_v2 = vld [vmem:[#allocation2] sm:$0xff]  ;;  %s204_s2 = smov [#allocation8]  }
  0x36   :  { %105 = vset.pattern.permute.xlu0 %v203_v0  ;;  %v50_v3 = vld [vmem:[#allocation7] sm:$0xff]  ;;  %v51_v4 = vld [vmem:[#allocation7 + $0x8] sm:$0xff]  ;;  %s88_s19 = sshll.u32 %s204_s2, 4  ;;  %s89_s19 = int_to_ptr.vmem [resolvable:$true] %s88_s19 }
  0x37   :  { %56 = vperm.xlu0 %105, %v53_v1   ;;  %s172_s21 = scalar_lea.vmem %s89_s19, 128  ;;  %p177_p11 = scmp.lt.s32.totalorder %s89_s19, %s89_s19 }
  0x38   :  { %p173_p10 = scmp.ne.s32.totalorder %s89_s19, %s172_s21  ;;  %p178_p12 = scmp.lt.s32.totalorder %s172_s21, %s172_s21 }
  0x3a   :  { %p179_p13 = por %p178_p12, %p177_p11 }
  0x3b   :  { %65 = vperm.xlu0 %105, %v52_v2  }
  0x3c   :  { %p180_p0 = pnand %p179_p13, %p173_p10 }
  0xb6   :  { %v57_v5 = vpop.permute.xlu0 %56 }
  0xb7   :  { %v59_v6 = vsub.f32 %v50_v3, %v57_v5  ;;  %v60_v7 = vsub.f32 %v51_v4, %v57_v5 }
  0xb9   :  { %v61_v8 = vand.u32 2147483647, %v59_v6  ;;  %v62_v9 = vand.u32 2147483647, %v60_v7 }
  0xba   :  { %v66_v10 = vpop.permute.xlu0 %65 }
  0xbb   :  { %v68_v11 = vmul.f32 %v66_v10, %v61_v8  ;;  %v69_v12 = vmul.f32 %v66_v10, %v62_v9 }
  0xbd   :  { %v70_v13 = vadd.f32 %v69_v12, %v68_v11 }
  0xbf   :  { %71 = vadd.xlane.f32.xlu1 %v70_v13 }
 0x14c   :  { %v72_v14 = vpop.xlane.xlu1 %71 }
 0x14d   :  { %v73_v15 = vrot.slane %v72_v14, 4 }
 0x14f   :  { %v74_v16 = vadd.f32 %v73_v15, %v72_v14 }
 0x151   :  { %v75_v17 = vrot.slane %v74_v16, 2 }
 0x153   :  { %v76_v18 = vadd.f32 %v75_v17, %v74_v16 }
 0x155   :  { %v77_v19 = vrot.slane %v76_v18, 1 }
 0x157   :  { %v78_v20 = vadd.f32 %v77_v19, %v76_v18 }
 0x159   :  { %98 = vpush %v78_v20 }
 0x18a   :  { %s99_s20 = spop %98 }
 0x18b   :  { %v80_v21 = vstv %s99_s20 }
 0x18c   :  { %81 = vst [vmem:[#allocation8] sm:$0xff] %v80_v21 }
 0x18d   :  { %183 = shalt.err (!%p180_p0)
}
 0x18e   :  { %s184_s24 = scalar_lea.hbm %s276_s3, 128 }
 0x18f   :  { %p185_p1 = scmp.ne.s32.totalorder %s276_s3, %s184_s24  ;;  %p188_p2 = scmp.lt.u32.totalorder %s184_s24, %s276_s3 }
 0x191   :  { %p190_p3 = pnand %p188_p2, %p185_p1 }
 0x193   :  { %193 = shalt.err (!%p190_p3)
}
 0x194   :  { %91 = dma.vmem_to_hbm [thread:$0]  %s89_s19, 128, %s276_s3, [#allocation4]  }
 0x195   :  { %198 = dma.done.wait [#allocation4], 128  }
 0x196   :  { %199 = vsyncadd [#allocation4], 4294967168 }
 0x197   :  { %95 = vsyncpa [#allocation3], 1 }
 0x198   :  { %96 = vsyncpa [#allocation6], 1 }
 0x199   :  { %97 = vsyncpa [#allocation4], 1 }

</bundles_post_ra>
